<compile_context>
chip_gen: v6e
topology: v6e:2x2x1
jax: 0.10.0
libtpu: 0.0.40
codegen_flags: <defaults>
</compile_context>

<pallas_src>
import functools

import jax
import jax.numpy as jnp
from jax.experimental import pallas as pl
from jax.experimental.pallas import tpu as pltpu


@functools.lru_cache(maxsize=1)
def _chip_config():
    """Generation-aware tile ceilings / VMEM budget / TensorCore count.

    v6e: highest compute:HBM ratio and 128 MiB VMEM -> biggest output tiles.
    v7x: 64 MiB VMEM, 2 TensorCores -> moderate tiles, <=48 MiB scoped budget.
    v5e: moderate tiles are already above its roofline ratio.
    Unknown chips fall back to the v7x-safe config (valid everywhere).
    """
    try:
        kind = jax.devices()[0].device_kind.lower()
    except Exception:
        kind = ""
    if "v6" in kind:
        return dict(tm=1024, tn=2048, tk=1024,
                    vmem_cap=96 * 1024 * 1024, num_tc=1)
    if "v5" in kind:
        return dict(tm=512, tn=1024, tk=1024,
                    vmem_cap=96 * 1024 * 1024, num_tc=1)
    # v7x / unknown: conservative VMEM, assume 2 TensorCores.
    return dict(tm=512, tn=1024, tk=1024,
                vmem_cap=48 * 1024 * 1024, num_tc=2)


def _pick_tile(dim, preferred, unit):
    """Largest tile <= preferred that is a multiple of `unit` and minimizes
    padded extent (balanced split: ceil(dim / n_tiles) rounded up to unit)."""
    n_tiles = pl.cdiv(dim, preferred)
    return unit * pl.cdiv(pl.cdiv(dim, n_tiles), unit)


def _linear_kernel(x_ref, w_ref, o_ref, acc_ref):
    # NOTE: correctness relies on K being the LAST (innermost, "arbitrary")
    # grid axis: the (i, j) output block and its f32 scratch accumulator stay
    # resident across all K steps.  Do not reorder the grid.
    @pl.when(pl.program_id(2) == 0)
    def _():
        acc_ref[...] = jnp.zeros_like(acc_ref)

    acc_ref[...] += jnp.dot(
        x_ref[...], w_ref[...], preferred_element_type=jnp.float32
    )

    @pl.when(pl.program_id(2) == pl.num_programs(2) - 1)
    def _():
        # Cast to the output dtype inside the kernel (epilogue): avoids an
        # extra f32 (Mp x Np) HBM round trip when out dtype is narrower, and
        # removes the separate XLA cast pass even for f32 outputs.
        o_ref[...] = acc_ref[...].astype(o_ref.dtype)


@functools.partial(
    jax.jit,
    static_argnames=("tm", "tn", "tk", "n_out", "out_dtype", "vmem_cap"),
)
def _linear_matmul(x2d, w_padded, *, tm, tn, tk, n_out, out_dtype, vmem_cap):
    """x2d: [M, K] (any float dtype), w_padded: [Kp, Np] (compute dtype,
    pre-padded to tile multiples). Returns [M, n_out] in out_dtype."""
    M, K = x2d.shape
    Kp, Np = w_padded.shape
    Mp = tm * pl.cdiv(M, tm)

    compute_dtype = w_padded.dtype
    # Cast + zero-pad x to tile multiples.  Under jit the cast and pad fuse
    # into a single pass; zero rows/cols contribute zeros to the f32 sum.
    xp = jnp.pad(x2d.astype(compute_dtype), ((0, Mp - M), (0, Kp - K)))

    grid = (Mp // tm, Np // tn, Kp // tk)

    in_bytes = jnp.dtype(compute_dtype).itemsize
    out_bytes = jnp.dtype(out_dtype).itemsize
    # Double-buffered input/output tiles + one resident f32 accumulator,
    # with 1.5x headroom; capped per generation (48 MiB on v7x).
    tiles_bytes = (
        2 * (tm * tk * in_bytes + tk * tn * in_bytes + tm * tn * out_bytes)
        + tm * tn * 4
    )
    vmem_limit = int(min(vmem_cap, max(32 * 1024 * 1024, int(1.5 * tiles_bytes))))

    out = pl.pallas_call(
        _linear_kernel,
        out_shape=jax.ShapeDtypeStruct((Mp, Np), out_dtype),
        grid_spec=pltpu.PrefetchScalarGridSpec(
            num_scalar_prefetch=0,
            grid=grid,
            in_specs=[
                pl.BlockSpec((tm, tk), lambda i, j, k: (i, k)),
                pl.BlockSpec((tk, tn), lambda i, j, k: (k, j)),
            ],
            out_specs=pl.BlockSpec((tm, tn), lambda i, j, k: (i, j)),
            scratch_shapes=[pltpu.VMEM((tm, tn), jnp.float32)],
        ),
        compiler_params=pltpu.CompilerParams(
            dimension_semantics=("parallel", "parallel", "arbitrary"),
            vmem_limit_bytes=vmem_limit,
        ),
    )(xp, w_padded)

    return out[:M, :n_out]


class LinearPallas:
    """JAX/Pallas equivalent of the PyTorch Linear module (y = x @ W_T)."""

    def __init__(self, in_features, out_features, key, dtype=jnp.float32,
                 compute_dtype=jnp.bfloat16):
        # compute_dtype=jnp.float32 is the exact-f32 escape hatch; bf16 with
        # f32 accumulation is the default MXU recipe on v5e/v6e/v7x.
        self.in_features = in_features
        self.out_features = out_features
        self.param_dtype = dtype
        self.compute_dtype = compute_dtype if compute_dtype is not None else dtype
        self._cfg = _chip_config()

        stdev = (2.0 / (in_features + out_features)) ** 0.5
        # trunc_normal_(mean=0, std=stdev, a=-3*stdev, b=3*stdev):
        # standard normal truncated to [-3, 3], scaled by stdev.
        self.weights_transposed = (
            jax.random.truncated_normal(
                key, -3.0, 3.0, (in_features, out_features), dtype=jnp.float32
            )
            * stdev
        ).astype(dtype)

        # K/N tiles depend only on the weight shape -> fix them now and cache
        # the padded, compute-dtype weight (built once, not per call).
        self._tk = _pick_tile(in_features, self._cfg["tk"], 128)
        self._tn = _pick_tile(out_features, self._cfg["tn"], 128)
        kp = self._tk * pl.cdiv(in_features, self._tk)
        np_ = self._tn * pl.cdiv(out_features, self._tn)
        w_c = self.weights_transposed.astype(self.compute_dtype)
        self._w_padded = jnp.pad(
            w_c, ((0, kp - in_features), (0, np_ - out_features))
        )

    def _pick_tm(self, m):
        tm_max = self._cfg["tm"]
        # Bucket tm (a static jit/pallas arg) into powers of two (>= 16) so
        # ragged / decode-style M values don't trigger recompiles; for
        # m >= 256 this also yields MXU-friendly multiples of 256.
        tm = min(tm_max, max(16, int(pl.next_power_of_2(int(m)))))
        # Keep >= 2 parallel (i, j) tiles on multi-TensorCore chips (v7x) so
        # a single giant tile doesn't idle one core.
        n_tiles = self._w_padded.shape[1] // self._tn
        if self._cfg["num_tc"] > 1 and tm >= 512 and n_tiles * pl.cdiv(m, tm) < 2:
            tm //= 2
        return tm

    def __call__(self, x):
        # einsum('... d_in, d_in d_out -> ... d_out')
        lead = x.shape[:-1]
        x2d = x.reshape(-1, self.in_features)
        m = x2d.shape[0]
        out_dtype = jnp.dtype(
            jnp.promote_types(x.dtype, self.weights_transposed.dtype)
        )
        if m == 0:
            return jnp.zeros((*lead, self.out_features), dtype=out_dtype)
        tm = self._pick_tm(m)
        y2d = _linear_matmul(
            x2d, self._w_padded,
            tm=tm, tn=self._tn, tk=self._tk,
            n_out=self.out_features, out_dtype=out_dtype,
            vmem_cap=self._cfg["vmem_cap"],
        )
        return y2d.reshape(*lead, self.out_features)


if __name__ == "__main__":
    key = jax.random.PRNGKey(0)
    k_w, k_x = jax.random.split(key)

    batch, seq, d_in, d_out = 2, 8, 32, 64
    layer = LinearPallas(d_in, d_out, key=k_w)
    x = jax.random.normal(k_x, (batch, seq, d_in), dtype=jnp.float32)

    y = layer(x)
    jax.block_until_ready(y)
    assert y.shape == (batch, seq, d_out)
    assert y.dtype == jnp.float32

    # Reference 1: same bf16-inputs / f32-accumulation recipe as the kernel.
    y_ref = jnp.einsum(
        "...i,io->...o",
        x.astype(layer.compute_dtype),
        layer.weights_transposed.astype(layer.compute_dtype),
        preferred_element_type=jnp.float32,
    ).astype(y.dtype)
    assert jnp.allclose(y, y_ref, atol=2e-2, rtol=2e-2)

    # Reference 2: exact f32 einsum, bf16-level tolerance (expected difference
    # from the bf16 compute path, not a bug).
    y_f32 = jnp.einsum("...i,io->...o", x, layer.weights_transposed)
    assert jnp.allclose(y, y_f32, atol=5e-2, rtol=5e-2)

    # Also exercise the exact-f32 escape hatch once.
    layer_f32 = LinearPallas(d_in, d_out, key=k_w, compute_dtype=jnp.float32)
    y_exact = layer_f32(x)
    jax.block_until_ready(y_exact)
    assert jnp.allclose(y_exact, y_f32, atol=1e-5, rtol=1e-5)

    print("KERNEL_OK")
</pallas_src>

<mosaic_0001>
module attributes {stable_mosaic.version = 11 : i64} {
  func.func @_linear_kernel(%arg0: i32, %arg1: i32, %arg2: i32, %arg3: memref<16x128xbf16, #tpu.memory_space<vmem>>, %arg4: memref<128x128xbf16, #tpu.memory_space<vmem>>, %arg5: memref<16x128xf32, #tpu.memory_space<vmem>>, %arg6: memref<16x128xf32, #tpu.memory_space<vmem>>) attributes {dimension_semantics = [#tpu.dimension_semantics<parallel>, #tpu.dimension_semantics<parallel>, #tpu.dimension_semantics<arbitrary>], iteration_bounds = array<i64: 1, 1, 1>, scalar_prefetch = 0 : i64, scratch_operands = 1 : i64, tpu.core_type = #tpu.core_type<tc>, window_params = [{transform_indices = @transform_0, window_bounds = array<i64: 16, 128>}, {transform_indices = @transform_1, window_bounds = array<i64: 128, 128>}, {transform_indices = @transform_2, window_bounds = array<i64: 16, 128>}]} {
    %c0_i32 = arith.constant 0 : i32
    %0 = arith.cmpi eq, %arg2, %c0_i32 : i32
    %1 = arith.extui %0 : i1 to i32
    %c0_i32_0 = arith.constant 0 : i32
    %2 = arith.cmpi ne, %1, %c0_i32_0 : i32
    scf.if %2 {
      %cst_10 = arith.constant 0.000000e+00 : f32
      %12 = vector.broadcast %cst_10 : f32 to vector<16x128xf32>
      %c0_11 = arith.constant 0 : index
      %c0_12 = arith.constant 0 : index
      %13 = vector.load %arg6[%c0_11, %c0_12] : memref<16x128xf32, #tpu.memory_space<vmem>>, vector<16x128xf32>
      tpu.vector_store %arg6[%c0_11, %c0_12], %12 {strides = array<i32>} : memref<16x128xf32, #tpu.memory_space<vmem>>, vector<16x128xf32>,
    } else {
    }
    %c0 = arith.constant 0 : index
    %c0_1 = arith.constant 0 : index
    %3 = vector.load %arg6[%c0, %c0_1] : memref<16x128xf32, #tpu.memory_space<vmem>>, vector<16x128xf32>
    %c0_2 = arith.constant 0 : index
    %c0_3 = arith.constant 0 : index
    %4 = vector.load %arg3[%c0_2, %c0_3] : memref<16x128xbf16, #tpu.memory_space<vmem>>, vector<16x128xbf16>
    %c0_4 = arith.constant 0 : index
    %c0_5 = arith.constant 0 : index
    %5 = vector.load %arg4[%c0_4, %c0_5] : memref<128x128xbf16, #tpu.memory_space<vmem>>, vector<128x128xbf16>
    %cst = arith.constant dense<0.000000e+00> : vector<16x128xf32>
    %6 = tpu.matmul %4, %5, %cst {dimension_numbers = #tpu.dot_dimension_numbers<[1], [0], [0], [1], [0, 0, 1, 1], [], []>} : vector<16x128xbf16>, vector<128x128xbf16>, vector<16x128xf32> -> vector<16x128xf32>
    %7 = arith.addf %3, %6 : vector<16x128xf32>
    %c0_6 = arith.constant 0 : index
    %c0_7 = arith.constant 0 : index
    %8 = vector.load %arg6[%c0_6, %c0_7] : memref<16x128xf32, #tpu.memory_space<vmem>>, vector<16x128xf32>
    tpu.vector_store %arg6[%c0_6, %c0_7], %7 {strides = array<i32>} : memref<16x128xf32, #tpu.memory_space<vmem>>, vector<16x128xf32>,
    %c0_i32_8 = arith.constant 0 : i32
    %9 = arith.cmpi eq, %arg2, %c0_i32_8 : i32
    %10 = arith.extui %9 : i1 to i32
    %c0_i32_9 = arith.constant 0 : i32
    %11 = arith.cmpi ne, %10, %c0_i32_9 : i32
    scf.if %11 {
      %c0_10 = arith.constant 0 : index
      %c0_11 = arith.constant 0 : index
      %12 = vector.load %arg6[%c0_10, %c0_11] : memref<16x128xf32, #tpu.memory_space<vmem>>, vector<16x128xf32>
      %c0_12 = arith.constant 0 : index
      %c0_13 = arith.constant 0 : index
      %13 = vector.load %arg5[%c0_12, %c0_13] : memref<16x128xf32, #tpu.memory_space<vmem>>, vector<16x128xf32>
      tpu.vector_store %arg5[%c0_12, %c0_13], %12 {strides = array<i32>} : memref<16x128xf32, #tpu.memory_space<vmem>>, vector<16x128xf32>,
    } else {
    }
    return
  }
  func.func @transform_0(%arg0: i32, %arg1: i32, %arg2: i32) -> (i32, i32) {
    %c0_i32 = arith.constant 0 : i32
    return %arg0, %arg2 : i32, i32
  }
  func.func @transform_1(%arg0: i32, %arg1: i32, %arg2: i32) -> (i32, i32) {
    %c0_i32 = arith.constant 0 : i32
    return %arg2, %arg1 : i32, i32
  }
  func.func @transform_2(%arg0: i32, %arg1: i32, %arg2: i32) -> (i32, i32) {
    %c0_i32 = arith.constant 0 : i32
    return %arg0, %arg1 : i32, i32
  }
}

</mosaic_0001>

<bundles_post_ra>
// kernel: _linear_matmul.1
= control target key start
LH: loop header
LB: loop body
LE: loop exit
PB: predicated region body
PF: predicated region fallthrough
CT: control target
= control target key end

     0   :  { %7 = vsyncpa [#allocation4], 0  ;;  %s307_s0 = inlined_call_operand.vmem [shape: bf16[16,128], index: 0, kind: input, shape index: {}]   ;;  %s308_s1 = inlined_call_operand.hbm [shape: bf16[128,128], index: 1, kind: input, shape index: {}]   ;;  %s309_s2 = inlined_call_operand.hbm [shape: f32[16,128], index: 2, kind: output, shape index: {}]  }
   0x1   :  { %8 = vsyncpa [#allocation5], 0  ;;  %s275_s9 = smov [#allocation3]  }
   0x2   :  { %s16_s10 = sshll.u32 %s275_s9, 4  ;;  %s17_s10 = int_to_ptr.vmem [resolvable:$true] %s16_s10 }
   0x3   :  { %s239_s11 = scalar_lea.vmem %s17_s10, 1024  ;;  %p244_p1 = scmp.lt.s32.totalorder %s17_s10, %s17_s10 }
   0x4   :  { %p240_p0 = scmp.ne.s32.totalorder %s17_s10, %s239_s11  ;;  %p245_p2 = scmp.lt.s32.totalorder %s239_s11, %s239_s11 }
   0x6   :  { %p246_p3 = por %p245_p2, %p244_p1 }
   0x8   :  { %p247_p4 = pnand %p246_p3, %p240_p0 }
   0xa   :  { %250 = shalt.err (!%p247_p4)
}
   0xb   :  { %s276_s12 = smov 64   ;;  %s277_s13 = smov 4  }
   0xc   :  { %22 = dma.hbm_to_vmem [thread:$0]  %s308_s1, 1024, %s17_s10, [#allocation4], %s276_s12, %s276_s12, %s277_s13  }
   0xd   :  { %271 = dma.done.wait [#allocation4], 1024  }
   0xe   :  { %272 = vsyncadd [#allocation4], 4294966272  ;;  %v278_v0 = vmov 0.0   ;;  %vm279_vm0 = vmmov 0   ;;  %v222_v1 = vld [vmem:[#allocation3 + $0x38] sm:$0xff]   ;;  %v223_v2 = vld [vmem:[#allocation3 + $0x30] sm:$0xff]  }
   0xf   :  { %194 = vmatprep.subr.bf16.mxu0 %v278_v0  ;;  %210 = vmatprep.mubr.msk.bf16.mxu0 %vm279_vm0, %v278_v0  ;;  %v224_v3 = vld [vmem:[#allocation3 + $0x28] sm:$0xff]   ;;  %v225_v4 = vld [vmem:[#allocation3 + $0x20] sm:$0xff]   ;;  %v226_v5 = vld [vmem:[#allocation3 + $0x18] sm:$0xff]   ;;  %s280_s17 = smov [#allocation6]  }
  0x10   :  { %195 = vmatpush3.bf16.msra.mxu0 %v222_v1  ;;  %v227_v6 = vld [vmem:[#allocation3 + $0x10] sm:$0xff]   ;;  %v228_v7 = vld [vmem:[#allocation3 + $0x8] sm:$0xff]   ;;  %v229_v8 = vld [vmem:[#allocation3] sm:$0xff]   ;;  %s164_s18 = sshll.u32 %s280_s17, 4  ;;  %s165_s18 = int_to_ptr.vmem [resolvable:$true] %s164_s18 }
  0x11   :  { %196 = vmatprep.subr.bf16.mxu0 %v278_v0  ;;  %v230_v9 = vld [vmem:[%s307_s0] sm:$0xff]   ;;  %s251_s19 = scalar_lea.vmem %s165_s18, 256  ;;  %p256_p6 = scmp.lt.s32.totalorder %s165_s18, %s165_s18 }
  0x12   :  { %p252_p5 = scmp.ne.s32.totalorder %s165_s18, %s251_s19  ;;  %p257_p7 = scmp.lt.s32.totalorder %s251_s19, %s251_s19 }
  0x14   :  { %197 = vmatpush3.bf16.msra.mxu0 %v223_v2  ;;  %p258_p8 = por %p257_p7, %p256_p6 }
  0x15   :  { %198 = vmatprep.subr.bf16.mxu0 %v278_v0 }
  0x16   :  { %p259_p9 = pnand %p258_p8, %p252_p5 }
  0x18   :  { %199 = vmatpush3.bf16.msra.mxu0 %v224_v3 }
  0x19   :  { %200 = vmatprep.subr.bf16.mxu0 %v278_v0 }
  0x1c   :  { %201 = vmatpush3.bf16.msra.mxu0 %v225_v4 }
  0x1d   :  { %202 = vmatprep.subr.bf16.mxu0 %v278_v0 }
  0x20   :  { %203 = vmatpush3.bf16.msra.mxu0 %v226_v5 }
  0x21   :  { %204 = vmatprep.subr.bf16.mxu0 %v278_v0 }
  0x24   :  { %205 = vmatpush3.bf16.msra.mxu0 %v227_v6 }
  0x25   :  { %206 = vmatprep.subr.bf16.mxu0 %v278_v0 }
  0x28   :  { %207 = vmatpush3.bf16.msra.mxu0 %v228_v7 }
  0x29   :  { %208 = vmatprep.subr.bf16.mxu0 %v278_v0 }
  0x2c   :  { %209 = vmatpush3.bf16.msra.mxu0 %v229_v8 }
  0x2f   :  { %211 = vmatmul.mubr.bf16.vlgmr.msra.gmra.mxu0 %v230_v9 }
  0xef   :  { %v141_v10 = vpop.f32.mrf.mxu0 }
  0xf0   :  { %157 = vst [vmem:[#allocation6] sm:$0xff] %v141_v10 }
  0xf1   :  { %v212_v11 = vpop.f32.mrf.mxu0 }
  0xf3   :  { %v144_v12 = vpop.f32.mrf.mxu0 }
  0xf4   :  { %158 = vst [vmem:[#allocation6 + $0x8] sm:$0xff] %v144_v12 }
  0xf5   :  { %v213_v13 = vpop.f32.mrf.mxu0 }
  0xf6   :  { %262 = shalt.err (!%p259_p9)
}
  0xf7   :  { %s281_s20 = smov 128   ;;  %s282_s0 = smov 8  }
  0xf8   :  { %170 = dma.vmem_to_hbm [thread:$0]  %s165_s18, 256, %s309_s2, [#allocation5], %s281_s20, %s281_s20, %s282_s0  }
  0xf9   :  { %273 = dma.done.wait [#allocation5], 256  }
  0xfa   :  { %274 = vsyncadd [#allocation5], 4294967040 }
  0xfb   :  { %174 = vsyncpa [#allocation4], 1 }
  0xfc   :  { %175 = vsyncpa [#allocation5], 1 }

</bundles_post_ra>
